<compile_context>
chip_gen: v6e
topology: v6e:2x2x1
jax: 0.10.0
libtpu: 0.0.40
codegen_flags: <defaults>
</compile_context>

<pallas_src>
import math
from typing import NamedTuple

import jax
import jax.numpy as jnp
from jax.experimental import pallas as pl
from jax.experimental.pallas import tpu as pltpu


# ---------------------------------------------------------------------------
# Pallas kernel
# ---------------------------------------------------------------------------
def _make_fusion_kernel(mxu_dtype):
    def _fusion_kernel(t_ref, s_ref, wt_ref, ws_ref, b_ref, o_ref):
        t_in = t_ref[...]
        s_in = s_ref[...]
        # MXU matmuls in mxu_dtype (bf16 by default) with f32 accumulation;
        # bias is stored in f32 so the add stays f32.
        logits = (
            jnp.dot(t_in.astype(mxu_dtype), wt_ref[...],
                    preferred_element_type=jnp.float32)
            + jnp.dot(s_in.astype(mxu_dtype), ws_ref[...],
                      preferred_element_type=jnp.float32)
            + b_ref[...]
        )
        gate = jax.nn.sigmoid(logits)           # EUP exp + VPU, f32
        t = t_in.astype(jnp.float32)
        s = s_in.astype(jnp.float32)
        o_ref[...] = (s + gate * (t - s)).astype(o_ref.dtype)
    return _fusion_kernel


# ---------------------------------------------------------------------------
# Tiling helpers
# ---------------------------------------------------------------------------
def _round_up(x, m):
    return ((x + m - 1) // m) * m


def _chip_info():
    """Returns (vmem_capacity_bytes, assume_two_tensorcores).

    Heuristic: v7x has 64 MiB VMEM per TensorCore and 2 TCs/chip; v5e/v6e have
    128 MiB and a single TC.  Falls back conservatively (v7x-like) if the
    query is unavailable.
    """
    try:
        cap = int(pltpu.get_tpu_info().vmem_capacity_bytes)
    except Exception:  # pragma: no cover - conservative fallback
        cap = 64 * 1024 * 1024
    return cap, cap <= 64 * 1024 * 1024


def _choose_tm(m_rows, d_lane, act_itemsize, w_itemsize, budget_bytes, two_cores):
    """Largest 32-aligned row tile whose pipelined VMEM footprint fits budget."""
    # 2 weights (+bias), conservatively assumed double-buffered (their
    # index_map is constant so they are only DMA'd once anyway).
    weight_bytes = 2 * 2 * d_lane * d_lane * w_itemsize
    bias_bytes = 2 * d_lane * 4
    avail = max(budget_bytes - weight_bytes - bias_bytes, 2 * 1024 * 1024)
    # t, s and out row tiles, each double-buffered.
    per_row = 3 * 2 * d_lane * act_itemsize
    tm = int(avail // per_row)
    tm = max(32, min(4096, (tm // 32) * 32))
    tm = min(tm, _round_up(m_rows, 32))
    if two_cores and m_rows > 32:
        # On two-TC chips, keep an even block count so both cores get equal
        # work on this memory-bound kernel.  Single-TC chips keep the largest
        # tile (no pointless split / extra per-step overhead).
        n_blocks = pl.cdiv(m_rows, tm)
        if n_blocks == 1:
            n_blocks = 2
        elif n_blocks % 2:
            n_blocks += 1
        tm = min(tm, _round_up(pl.cdiv(m_rows, n_blocks), 32))
    return max(32, tm)


# ---------------------------------------------------------------------------
# Weight preparation (once per module): lane-folding + optional bf16 cast
# ---------------------------------------------------------------------------
class FusionWeights(NamedTuple):
    fold: int
    w_t: jax.Array        # (fold*D, fold*D), block-diagonal if fold > 1
    w_s: jax.Array
    b: jax.Array           # (1, fold*D), f32
    mxu_dtype: jnp.dtype


def prepare_fusion_weights(w_t, w_s, b, *, mxu_bf16=True):
    D = w_t.shape[0]
    # Lane folding for narrow embed dims: (M, D) -> (M/f, f*D), f = 128/D,
    # block-diagonal weights + f-tiled bias => lane-dense stores, full-width
    # MXU tiles.
    fold = 128 // D if (D < 128 and 128 % D == 0) else 1
    w_dtype = jnp.bfloat16 if mxu_bf16 else jnp.float32
    w_t32 = w_t.astype(jnp.float32)
    w_s32 = w_s.astype(jnp.float32)
    b32 = b.astype(jnp.float32).reshape(-1)
    if fold > 1:
        eye = jnp.eye(fold, dtype=jnp.float32)
        wt2 = jnp.kron(eye, w_t32).astype(w_dtype)
        ws2 = jnp.kron(eye, w_s32).astype(w_dtype)
        b2 = jnp.tile(b32, fold).reshape(1, fold * D)
    else:
        wt2 = w_t32.astype(w_dtype)
        ws2 = w_s32.astype(w_dtype)
        b2 = b32.reshape(1, D)
    return FusionWeights(fold=fold, w_t=wt2, w_s=ws2, b=b2, mxu_dtype=w_dtype)


# ---------------------------------------------------------------------------
# Fusion over an arbitrary [..., D] activation pair via the Pallas kernel
# ---------------------------------------------------------------------------
def fusion_gate(t_patches, s_patches, weights: FusionWeights):
    orig_shape = t_patches.shape
    D = orig_shape[-1]
    M = math.prod(orig_shape[:-1])
    act_dtype = t_patches.dtype
    fold = weights.fold
    d_lane = D * fold

    t2 = t_patches.reshape(M, D)
    s2 = s_patches.reshape(M, D)

    # Keep stores lane-dense: pad a handful of rows so the contiguous
    # (M, D) -> (M/fold, fold*D) reshape is valid for any M.
    pad_rows = (-M) % fold
    if pad_rows:
        t2 = jnp.pad(t2, ((0, pad_rows), (0, 0)))
        s2 = jnp.pad(s2, ((0, pad_rows), (0, 0)))
    m_total = M + pad_rows
    m_rows = m_total // fold
    t2 = t2.reshape(m_rows, d_lane)
    s2 = s2.reshape(m_rows, d_lane)

    vmem_cap, two_cores = _chip_info()
    if vmem_cap <= 64 * 1024 * 1024:           # v7x-like
        budget, vmem_limit = 40 * 1024 * 1024, 48 * 1024 * 1024
    else:                                       # v5e / v6e (128 MiB VMEM)
        budget, vmem_limit = 88 * 1024 * 1024, 100 * 1024 * 1024

    tm = _choose_tm(m_rows, d_lane,
                    jnp.dtype(act_dtype).itemsize,
                    jnp.dtype(weights.w_t.dtype).itemsize,
                    budget, two_cores)
    n_blocks = pl.cdiv(m_rows, tm)

    # Partial last block is handled by Pallas read-padding / write-masking:
    # no extra jnp.pad / output-slice HBM pass on the row-tile axis.
    out = pl.pallas_call(
        _make_fusion_kernel(weights.mxu_dtype),
        out_shape=jax.ShapeDtypeStruct((m_rows, d_lane), act_dtype),
        grid_spec=pltpu.PrefetchScalarGridSpec(
            num_scalar_prefetch=0,
            grid=(n_blocks,),
            in_specs=[
                pl.BlockSpec((tm, d_lane), lambda i: (i, 0)),       # t rows
                pl.BlockSpec((tm, d_lane), lambda i: (i, 0)),       # s rows
                pl.BlockSpec((d_lane, d_lane), lambda i: (0, 0)),   # w_t (resident)
                pl.BlockSpec((d_lane, d_lane), lambda i: (0, 0)),   # w_s (resident)
                pl.BlockSpec((1, d_lane), lambda i: (0, 0)),        # bias (f32)
            ],
            out_specs=pl.BlockSpec((tm, d_lane), lambda i: (i, 0)),
        ),
        compiler_params=pltpu.CompilerParams(
            dimension_semantics=("parallel",),
            vmem_limit_bytes=vmem_limit,
        ),
    )(t2, s2, weights.w_t, weights.w_s, weights.b)

    out = out.reshape(m_total, D)
    if pad_rows:
        out = out[:M]
    return out.reshape(orig_shape)


# ---------------------------------------------------------------------------
# recover_mask: scatter patches into the full [B, N_full, P_full, D] grid,
# filling masked slots with a (mask/constant) token.  Pure indexing -> JAX.
# ---------------------------------------------------------------------------
def recover_mask(patches, mask_token, t_uti, t_mti, s_uti, s_mti):
    B, N_unmask, P_unmask, D = patches.shape
    if t_uti is not None and s_uti is not None:
        P_full = len(t_uti) + len(t_mti)
        N_full = len(s_uti) + len(s_mti)
        temp1 = jnp.broadcast_to(mask_token, (B, N_unmask, P_full, D))
        temp1 = temp1.at[:, :, jnp.asarray(t_uti), :].set(patches)
        temp2 = jnp.broadcast_to(mask_token, (B, N_full, P_full, D))
        temp2 = temp2.at[:, jnp.asarray(s_uti), :, :].set(temp1)
        return temp2
    elif s_uti is not None:
        N_full = len(s_uti) + len(s_mti)
        out = jnp.broadcast_to(mask_token, (B, N_full, P_unmask, D))
        return out.at[:, jnp.asarray(s_uti), :, :].set(patches)
    elif t_uti is not None:
        P_full = len(t_uti) + len(t_mti)
        out = jnp.broadcast_to(mask_token, (B, N_unmask, P_full, D))
        return out.at[:, :, jnp.asarray(t_uti), :].set(patches)
    else:
        return patches


def _fuse_constant(t_tok, s_tok, w_t, w_s, b):
    """Fused output of the (constant) mask-token pair, in plain f32 JAX."""
    logits = jnp.matmul(t_tok, w_t) + jnp.matmul(s_tok, w_s) + b
    gate = jax.nn.sigmoid(logits)
    return s_tok + gate * (t_tok - s_tok)       # shape (1, 1, 1, D)


# ---------------------------------------------------------------------------
# Module
# ---------------------------------------------------------------------------
class EncoderFusion:
    """JAX/Pallas port of the PyTorch EncoderFusion module."""

    def __init__(self, embed_dim, key, *, mxu_bf16=True):
        k1, k2, k3, k4, k5 = jax.random.split(key, 5)
        self.w_t = jax.random.normal(k1, (embed_dim, embed_dim), jnp.float32)
        self.w_s = jax.random.normal(k2, (embed_dim, embed_dim), jnp.float32)
        self.b = jax.random.normal(k3, (embed_dim,), jnp.float32)
        # trunc_normal(std=0.02), truncated at +/- 2 std like torch's default.
        self.t_mask_token = 0.02 * jax.random.truncated_normal(
            k4, -2.0, 2.0, (1, 1, 1, embed_dim), jnp.float32)
        self.s_mask_token = 0.02 * jax.random.truncated_normal(
            k5, -2.0, 2.0, (1, 1, 1, embed_dim), jnp.float32)
        # Folded / cast weights are precomputed once per module.
        self.weights = prepare_fusion_weights(
            self.w_t, self.w_s, self.b, mxu_bf16=mxu_bf16)

    def __call__(self, t_x, t_mti, t_uti, s_x, s_mti, s_uti):
        # Run the kernel ONLY on the compact unmasked patches: kernel HBM
        # traffic scales with the unmasked fraction, not the recovered grid.
        fused = fusion_gate(t_x, s_x, self.weights)
        if t_uti is None and s_uti is None:
            return fused
        # Every masked slot has t == t_mask_token and s == s_mask_token, so
        # its fused output is one constant D-vector.  Compute it once in f32
        # and scatter the kernel output around it in a single pass.
        fused_mask_token = _fuse_constant(
            self.t_mask_token, self.s_mask_token, self.w_t, self.w_s, self.b)
        return recover_mask(fused, fused_mask_token, t_uti, t_mti, s_uti, s_mti)


# ---------------------------------------------------------------------------
# Reference + tests
# ---------------------------------------------------------------------------
def _reference(t_patches, s_patches, w_t, w_s, b):
    gate = jax.nn.sigmoid(t_patches @ w_t + s_patches @ w_s + b)
    return gate * t_patches + (1.0 - gate) * s_patches


if __name__ == "__main__":
    key = jax.random.PRNGKey(0)
    k_mod, k_t, k_s, k_t2, k_s2 = jax.random.split(key, 5)

    embed_dim = 32
    B = 2

    # Same key => identical parameters; only the MXU operand dtype differs.
    module_bf16 = EncoderFusion(embed_dim, k_mod)                  # default perf path
    module_f32 = EncoderFusion(embed_dim, k_mod, mxu_bf16=False)   # exact f32 path

    # --- Case 1: extrapolation (both temporal and spatial masks present).
    t_uti = [0, 2, 4, 5]
    t_mti = [1, 3, 6, 7]        # P_full = 8
    s_uti = [0, 2]
    s_mti = [1, 3]              # N_full = 4
    N_unmask, P_unmask = len(s_uti), len(t_uti)

    t_x = jax.random.normal(k_t, (B, N_unmask, P_unmask, embed_dim), jnp.float32)
    s_x = jax.random.normal(k_s, (B, N_unmask, P_unmask, embed_dim), jnp.float32)

    # Full-grid reference, exactly as the PyTorch module computes it.
    t_full = recover_mask(t_x, module_f32.t_mask_token, t_uti, t_mti, s_uti, s_mti)
    s_full = recover_mask(s_x, module_f32.s_mask_token, t_uti, t_mti, s_uti, s_mti)
    ref = _reference(t_full, s_full, module_f32.w_t, module_f32.w_s, module_f32.b)

    out_f32 = jax.block_until_ready(module_f32(t_x, t_mti, t_uti, s_x, s_mti, s_uti))
    assert out_f32.shape == (B, len(s_uti) + len(s_mti),
                             len(t_uti) + len(t_mti), embed_dim)
    assert jnp.allclose(out_f32, ref, atol=1e-5, rtol=1e-5)

    out_bf16 = jax.block_until_ready(module_bf16(t_x, t_mti, t_uti, s_x, s_mti, s_uti))
    assert out_bf16.shape == ref.shape
    # bf16 MXU operands: logits carry ~bf16 rounding error; loose tolerance.
    assert float(jnp.max(jnp.abs(out_bf16 - ref))) < 0.25

    # --- Case 2: pre-training (no masks); row count 2*3*5 = 30 is not a
    # multiple of the 128/D fold, exercising the row-padding path.
    t_x2 = jax.random.normal(k_t2, (B, 3, 5, embed_dim), jnp.float32)
    s_x2 = jax.random.normal(k_s2, (B, 3, 5, embed_dim), jnp.float32)
    ref2 = _reference(t_x2, s_x2, module_f32.w_t, module_f32.w_s, module_f32.b)

    out2 = jax.block_until_ready(module_f32(t_x2, None, None, s_x2, None, None))
    assert jnp.allclose(out2, ref2, atol=1e-5, rtol=1e-5)

    out2b = jax.block_until_ready(module_bf16(t_x2, None, None, s_x2, None, None))
    assert float(jnp.max(jnp.abs(out2b - ref2))) < 0.25

    print("KERNEL_OK")
</pallas_src>

<mosaic_0001>
module attributes {stable_mosaic.version = 11 : i64} {
  func.func @_fusion_kernel(%arg0: i32, %arg1: memref<32x128xf32, #tpu.memory_space<vmem>>, %arg2: memref<32x128xf32, #tpu.memory_space<vmem>>, %arg3: memref<128x128xf32, #tpu.memory_space<vmem>>, %arg4: memref<128x128xf32, #tpu.memory_space<vmem>>, %arg5: memref<1x128xf32, #tpu.memory_space<vmem>>, %arg6: memref<32x128xf32, #tpu.memory_space<vmem>>) attributes {dimension_semantics = [#tpu.dimension_semantics<parallel>], iteration_bounds = array<i64: 1>, scalar_prefetch = 0 : i64, scratch_operands = 0 : i64, tpu.core_type = #tpu.core_type<tc>, window_params = [{transform_indices = @transform_0, window_bounds = array<i64: 32, 128>}, {transform_indices = @transform_1, window_bounds = array<i64: 32, 128>}, {pipeline_mode = #tpu.pipeline_mode<synchronous>, transform_indices = @transform_2, window_bounds = array<i64: 128, 128>}, {pipeline_mode = #tpu.pipeline_mode<synchronous>, transform_indices = @transform_3, window_bounds = array<i64: 128, 128>}, {pipeline_mode = #tpu.pipeline_mode<synchronous>, transform_indices = @transform_4, window_bounds = array<i64: 1, 128>}, {transform_indices = @transform_5, window_bounds = array<i64: 32, 128>}]} {
    %c0 = arith.constant 0 : index
    %c0_0 = arith.constant 0 : index
    %0 = vector.load %arg1[%c0, %c0_0] : memref<32x128xf32, #tpu.memory_space<vmem>>, vector<32x128xf32>
    %c0_1 = arith.constant 0 : index
    %c0_2 = arith.constant 0 : index
    %1 = vector.load %arg2[%c0_1, %c0_2] : memref<32x128xf32, #tpu.memory_space<vmem>>, vector<32x128xf32>
    %c0_3 = arith.constant 0 : index
    %c0_4 = arith.constant 0 : index
    %2 = vector.load %arg3[%c0_3, %c0_4] : memref<128x128xf32, #tpu.memory_space<vmem>>, vector<128x128xf32>
    %cst = arith.constant dense<0.000000e+00> : vector<32x128xf32>
    %3 = tpu.matmul %0, %2, %cst {dimension_numbers = #tpu.dot_dimension_numbers<[1], [0], [0], [1], [0, 0, 1, 1], [], []>} : vector<32x128xf32>, vector<128x128xf32>, vector<32x128xf32> -> vector<32x128xf32>
    %c0_5 = arith.constant 0 : index
    %c0_6 = arith.constant 0 : index
    %4 = vector.load %arg4[%c0_5, %c0_6] : memref<128x128xf32, #tpu.memory_space<vmem>>, vector<128x128xf32>
    %cst_7 = arith.constant dense<0.000000e+00> : vector<32x128xf32>
    %5 = tpu.matmul %1, %4, %cst_7 {dimension_numbers = #tpu.dot_dimension_numbers<[1], [0], [0], [1], [0, 0, 1, 1], [], []>} : vector<32x128xf32>, vector<128x128xf32>, vector<32x128xf32> -> vector<32x128xf32>
    %6 = arith.addf %3, %5 : vector<32x128xf32>
    %c0_8 = arith.constant 0 : index
    %c0_9 = arith.constant 0 : index
    %7 = vector.load %arg5[%c0_8, %c0_9] : memref<1x128xf32, #tpu.memory_space<vmem>>, vector<1x128xf32>
    %8 = vector.broadcast %7 : vector<1x128xf32> to vector<32x128xf32>
    %9 = arith.addf %6, %8 : vector<32x128xf32>
    %10 = arith.negf %9 : vector<32x128xf32>
    %11 = math.exp %10 : vector<32x128xf32>
    %cst_10 = arith.constant 1.000000e+00 : f32
    %12 = vector.broadcast %cst_10 : f32 to vector<32x128xf32>
    %13 = arith.addf %12, %11 : vector<32x128xf32>
    %14 = arith.divf %12, %13 : vector<32x128xf32>
    %15 = arith.subf %0, %1 : vector<32x128xf32>
    %16 = arith.mulf %14, %15 : vector<32x128xf32>
    %17 = arith.addf %1, %16 : vector<32x128xf32>
    %c0_11 = arith.constant 0 : index
    %c0_12 = arith.constant 0 : index
    %18 = vector.load %arg6[%c0_11, %c0_12] : memref<32x128xf32, #tpu.memory_space<vmem>>, vector<32x128xf32>
    tpu.vector_store %arg6[%c0_11, %c0_12], %17 {strides = array<i32>} : memref<32x128xf32, #tpu.memory_space<vmem>>, vector<32x128xf32>,
    return
  }
  func.func @transform_0(%arg0: i32) -> (i32, i32) {
    %c0_i32 = arith.constant 0 : i32
    %c0_i32_0 = arith.constant 0 : i32
    return %arg0, %c0_i32 : i32, i32
  }
  func.func @transform_1(%arg0: i32) -> (i32, i32) {
    %c0_i32 = arith.constant 0 : i32
    %c0_i32_0 = arith.constant 0 : i32
    return %arg0, %c0_i32 : i32, i32
  }
  func.func @transform_2(%arg0: i32) -> (i32, i32) {
    %c0_i32 = arith.constant 0 : i32
    %c0_i32_0 = arith.constant 0 : i32
    %c0_i32_1 = arith.constant 0 : i32
    return %c0_i32, %c0_i32_0 : i32, i32
  }
  func.func @transform_3(%arg0: i32) -> (i32, i32) {
    %c0_i32 = arith.constant 0 : i32
    %c0_i32_0 = arith.constant 0 : i32
    %c0_i32_1 = arith.constant 0 : i32
    return %c0_i32, %c0_i32_0 : i32, i32
  }
  func.func @transform_4(%arg0: i32) -> (i32, i32) {
    %c0_i32 = arith.constant 0 : i32
    %c0_i32_0 = arith.constant 0 : i32
    %c0_i32_1 = arith.constant 0 : i32
    return %c0_i32, %c0_i32_0 : i32, i32
  }
  func.func @transform_5(%arg0: i32) -> (i32, i32) {
    %c0_i32 = arith.constant 0 : i32
    %c0_i32_0 = arith.constant 0 : i32
    return %arg0, %c0_i32 : i32, i32
  }
}

</mosaic_0001>

<bundles_post_ra>
// kernel: tpu_custom_call.1
= control target key start
LH: loop header
LB: loop body
LE: loop exit
PB: predicated region body
PF: predicated region fallthrough
CT: control target
= control target key end

     0   :  { %10 = vsyncpa [#allocation3], 0  ;;  %s694_s0 = inlined_call_operand.hbm [shape: f32[4,128], index: 0, kind: input, shape index: {}]   ;;  %s695_s1 = inlined_call_operand.hbm [shape: f32[4,128], index: 1, kind: input, shape index: {}]   ;;  %s696_s2 = inlined_call_operand.hbm [shape: f32[128,128], index: 2, kind: input, shape index: {}]   ;;  %s697_s3 = inlined_call_operand.hbm [shape: f32[128,128], index: 3, kind: input, shape index: {}]   ;;  %s698_s4 = inlined_call_operand.vmem [shape: f32[1,128], index: 4, kind: input, shape index: {}]   ;;  %s699_s5 = inlined_call_operand.hbm [shape: f32[4,128], index: 5, kind: output, shape index: {}]  }
   0x1   :  { %11 = vsyncpa [#allocation6], 0 }
   0x2   :  { %12 = vsyncpa [#allocation9], 0 }
   0x3   :  { %13 = vsyncpa [#allocation4], 0 }
   0x4   :  { %18 = vsyncadd [#allocation3], 448  ;;  %s610_s18 = smov [#allocation2]  }
   0x5   :  { %s19_s19 = sshll.u32 %s610_s18, 4  ;;  %s20_s19 = int_to_ptr.vmem [resolvable:$true] %s19_s19 }
   0x6   :  { %s510_s20 = scalar_lea.vmem %s20_s19, 64  ;;  %s514_s21 = scalar_lea.vmem %s20_s19, 512 }
   0x7   :  { %p511_p0 = scmp.ne.s32.totalorder %s20_s19, %s510_s20  ;;  %p515_p1 = scmp.lt.s32.totalorder %s20_s19, %s20_s19 }
   0x8   :  { %p516_p2 = scmp.lt.s32.totalorder %s514_s21, %s510_s20 }
   0xa   :  { %p517_p3 = por %p516_p2, %p515_p1 }
   0xc   :  { %p518_p4 = pnand %p517_p3, %p511_p0 }
   0xe   :  { %521 = shalt.err (!%p518_p4)
}
   0xf   :  { %s611_s22 = smov 64   ;;  %s612_s23 = smov 4  }
  0x10   :  { %25 = dma.hbm_to_vmem [thread:$0]  %s694_s0, 64, %s20_s19, [#allocation3], %s611_s22, %s611_s22, %s612_s23  }
  0x11   :  { %30 = vsyncadd [#allocation6], 448  ;;  %s613_s26 = smov [#allocation5]   ;;  %s614_s28 = smov [#allocation7]  }
  0x12   :  { %s31_s27 = sshll.u32 %s613_s26, 4  ;;  %s43_s29 = sshll.u32 %s614_s28, 4  ;;  %s32_s27 = int_to_ptr.vmem [resolvable:$true] %s31_s27  ;;  %s44_s29 = int_to_ptr.vmem [resolvable:$true] %s43_s29 }
  0x13   :  { %s530_s30 = scalar_lea.vmem %s32_s27, 64  ;;  %s534_s6 = scalar_lea.vmem %s32_s27, 512 }
  0x14   :  { %p531_p5 = scmp.ne.s32.totalorder %s32_s27, %s530_s30  ;;  %p535_p6 = scmp.lt.s32.totalorder %s32_s27, %s32_s27 }
  0x15   :  { %p536_p7 = scmp.lt.s32.totalorder %s534_s6, %s530_s30 }
  0x17   :  { %p537_p8 = por %p536_p7, %p535_p6 }
  0x19   :  { %p538_p9 = pnand %p537_p8, %p531_p5 }
  0x1b   :  { %541 = shalt.err (!%p538_p9)
}
  0x1c   :  { %37 = dma.hbm_to_vmem [thread:$0]  %s695_s1, 64, %s32_s27, [#allocation6], %s611_s22, %s611_s22, %s612_s23  }
  0x1d   :  { %s550_s8 = scalar_lea.vmem %s44_s29, 2048  ;;  %p555_p11 = scmp.lt.s32.totalorder %s44_s29, %s44_s29 }
  0x1e   :  { %p551_p10 = scmp.ne.s32.totalorder %s44_s29, %s550_s8  ;;  %p556_p12 = scmp.lt.s32.totalorder %s550_s8, %s550_s8 }
  0x20   :  { %p557_p13 = por %p556_p12, %p555_p11 }
  0x22   :  { %p558_p0 = pnand %p557_p13, %p551_p10 }
  0x24   :  { %561 = shalt.err (!%p558_p0)
}
  0x25   :  { %s615_s9 = smov 128   ;;  %s616_s10 = smov 8  }
  0x26   :  { %49 = dma.hbm_to_vmem [thread:$0]  %s696_s2, 2048, %s44_s29, [#allocation6], %s615_s9, %s615_s9, %s616_s10  }
  0x27   :  { %s617_s13 = smov [#allocation8]  }
  0x28   :  { %s55_s14 = sshll.u32 %s617_s13, 4  ;;  %s56_s14 = int_to_ptr.vmem [resolvable:$true] %s55_s14 }
  0x29   :  { %s570_s15 = scalar_lea.vmem %s56_s14, 2048  ;;  %p575_p2 = scmp.lt.s32.totalorder %s56_s14, %s56_s14 }
  0x2a   :  { %p571_p1 = scmp.ne.s32.totalorder %s56_s14, %s570_s15  ;;  %p576_p3 = scmp.lt.s32.totalorder %s570_s15, %s570_s15 }
  0x2c   :  { %p577_p4 = por %p576_p3, %p575_p2 }
  0x2e   :  { %p578_p5 = pnand %p577_p4, %p571_p1 }
  0x30   :  { %581 = shalt.err (!%p578_p5)
}
  0x31   :  { %61 = dma.hbm_to_vmem [thread:$0]  %s697_s3, 2048, %s56_s14, [#allocation9], %s615_s9, %s615_s9, %s616_s10  }
  0x32   :  { %602 = dma.done.wait [#allocation3], 512  }
  0x33   :  { %603 = vsyncadd [#allocation3], 4294966784 }
  0x34   :  { %604 = dma.done.wait [#allocation6], 2560  }
  0x35   :  { %605 = vsyncadd [#allocation6], 4294964736 }
  0x36   :  { %606 = dma.done.wait [#allocation9], 2048  }
  0x37   :  { %607 = vsyncadd [#allocation9], 4294965248  ;;  %v115_v0 = vld [vmem:[#allocation8 + $0x78] sm:$0xff]  ;;  %v114_v2 = vld [vmem:[#allocation8 + $0x70] sm:$0xff] }
  0x38   :  { %v99_v1 = vld [vmem:[#allocation7 + $0x78] sm:$0xff]  ;;  %401 = vmatprep.subr.mxu0 %v115_v0  ;;  %v98_v3 = vld [vmem:[#allocation7 + $0x70] sm:$0xff]  ;;  %v113_v4 = vld [vmem:[#allocation8 + $0x68] sm:$0xff] }
  0x39   :  { %439 = vmatprep.subr.mxu1 %v99_v1  ;;  %402 = vmatpush3.msra.mxu0 %v115_v0  ;;  %v97_v5 = vld [vmem:[#allocation7 + $0x68] sm:$0xff]  ;;  %v112_v6 = vld [vmem:[#allocation8 + $0x60] sm:$0xff]  ;;  %v111_v8 = vld [vmem:[#allocation8 + $0x58] sm:$0xff] }
  0x3a   :  { %440 = vmatpush3.msra.mxu1 %v99_v1  ;;  %403 = vmatprep.subr.mxu0 %v114_v2  ;;  %v96_v7 = vld [vmem:[#allocation7 + $0x60] sm:$0xff]  ;;  %v95_v9 = vld [vmem:[#allocation7 + $0x58] sm:$0xff]  ;;  %v110_v10 = vld [vmem:[#allocation8 + $0x50] sm:$0xff] }
  0x3b   :  { %441 = vmatprep.subr.mxu1 %v98_v3  ;;  %404 = vmatpush3.msra.mxu0 %v114_v2  ;;  %v94_v11 = vld [vmem:[#allocation7 + $0x50] sm:$0xff]  ;;  %v109_v12 = vld [vmem:[#allocation8 + $0x48] sm:$0xff]  ;;  %v108_v14 = vld [vmem:[#allocation8 + $0x40] sm:$0xff] }
  0x3c   :  { %442 = vmatpush3.msra.mxu1 %v98_v3  ;;  %405 = vmatprep.subr.mxu0 %v113_v4  ;;  %v93_v13 = vld [vmem:[#allocation7 + $0x48] sm:$0xff]  ;;  %v92_v15 = vld [vmem:[#allocation7 + $0x40] sm:$0xff]  ;;  %v107_v16 = vld [vmem:[#allocation8 + $0x38] sm:$0xff] }
  0x3d   :  { %443 = vmatprep.subr.mxu1 %v97_v5  ;;  %406 = vmatpush3.msra.mxu0 %v113_v4  ;;  %v91_v17 = vld [vmem:[#allocation7 + $0x38] sm:$0xff]  ;;  %v106_v18 = vld [vmem:[#allocation8 + $0x30] sm:$0xff]  ;;  %v105_v20 = vld [vmem:[#allocation8 + $0x28] sm:$0xff] }
  0x3e   :  { %444 = vmatpush3.msra.mxu1 %v97_v5  ;;  %407 = vmatprep.subr.mxu0 %v112_v6  ;;  %v90_v19 = vld [vmem:[#allocation7 + $0x30] sm:$0xff]  ;;  %v89_v21 = vld [vmem:[#allocation7 + $0x28] sm:$0xff]  ;;  %v104_v22 = vld [vmem:[#allocation8 + $0x20] sm:$0xff] }
  0x3f   :  { %445 = vmatprep.subr.mxu1 %v96_v7  ;;  %408 = vmatpush3.msra.mxu0 %v112_v6  ;;  %v88_v23 = vld [vmem:[#allocation7 + $0x20] sm:$0xff]  ;;  %v103_v24 = vld [vmem:[#allocation8 + $0x18] sm:$0xff]  ;;  %v102_v26 = vld [vmem:[#allocation8 + $0x10] sm:$0xff] }
  0x40   :  { %446 = vmatpush3.msra.mxu1 %v96_v7  ;;  %409 = vmatprep.subr.mxu0 %v111_v8  ;;  %v87_v25 = vld [vmem:[#allocation7 + $0x18] sm:$0xff]  ;;  %v86_v27 = vld [vmem:[#allocation7 + $0x10] sm:$0xff]  ;;  %v101_v28 = vld [vmem:[#allocation8 + $0x8] sm:$0xff] }
  0x41   :  { %447 = vmatprep.subr.mxu1 %v95_v9  ;;  %410 = vmatpush3.msra.mxu0 %v111_v8  ;;  %v85_v29 = vld [vmem:[#allocation7 + $0x8] sm:$0xff]  ;;  %v100_v30 = vld [vmem:[#allocation8] sm:$0xff]  ;;  %v672_v36 = vld [vmem:[#allocation5 + $0x10] sm:$0xff] }
  0x42   :  { %448 = vmatpush3.msra.mxu1 %v95_v9  ;;  %411 = vmatprep.subr.mxu0 %v110_v10  ;;  %v84_v31 = vld [vmem:[#allocation7] sm:$0xff]  ;;  %v81_v34 = vld [vmem:[#allocation5 + $0x8] sm:$0xff]  ;;  %v674_v37 = vld [vmem:[#allocation2 + $0x10] sm:$0xff] }
  0x43   :  { %449 = vmatprep.subr.mxu1 %v94_v11  ;;  %412 = vmatpush3.msra.mxu0 %v110_v10  ;;  %v667_v32 = vld [vmem:[#allocation5] sm:$0xff]  ;;  %v77_v35 = vld [vmem:[#allocation2 + $0x8] sm:$0xff]  ;;  %v83_v38 = vld [vmem:[#allocation5 + $0x18] sm:$0xff] }
  0x44   :  { %450 = vmatpush3.msra.mxu1 %v94_v11  ;;  %413 = vmatprep.subr.mxu0 %v109_v12  ;;  %v669_v33 = vld [vmem:[#allocation2] sm:$0xff]  ;;  %v79_v39 = vld [vmem:[#allocation2 + $0x18] sm:$0xff]  ;;  %v322_v5 = vsub.f32 %v77_v35, %v81_v34  ;;  %v323_v11 = vsub.f32 %v674_v37, %v672_v36 }
  0x45   :  { %451 = vmatprep.subr.mxu1 %v93_v13  ;;  %414 = vmatpush3.msra.mxu0 %v109_v12  ;;  %v356_v42 = vld [vmem:[%s698_s4] ss:$0 sm:$0xff]  ;;  %v321_v6 = vsub.f32 %v669_v33, %v667_v32  ;;  %v324_v8 = vsub.f32 %v79_v39, %v83_v38 }
  0x46   :  { %452 = vmatpush3.msra.mxu1 %v93_v13  ;;  %415 = vmatprep.subr.mxu0 %v108_v14 }
  0x47   :  { %453 = vmatprep.subr.mxu1 %v92_v15  ;;  %416 = vmatpush3.msra.mxu0 %v108_v14 }
  0x48   :  { %454 = vmatpush3.msra.mxu1 %v92_v15  ;;  %417 = vmatprep.subr.mxu0 %v107_v16 }
  0x49   :  { %455 = vmatprep.subr.mxu1 %v91_v17  ;;  %418 = vmatpush3.msra.mxu0 %v107_v16 }
  0x4a   :  { %456 = vmatpush3.msra.mxu1 %v91_v17  ;;  %419 = vmatprep.subr.mxu0 %v106_v18 }
  0x4b   :  { %457 = vmatprep.subr.mxu1 %v90_v19  ;;  %420 = vmatpush3.msra.mxu0 %v106_v18 }
  0x4c   :  { %458 = vmatpush3.msra.mxu1 %v90_v19  ;;  %421 = vmatprep.subr.mxu0 %v105_v20 }
  0x4d   :  { %459 = vmatprep.subr.mxu1 %v89_v21  ;;  %422 = vmatpush3.msra.mxu0 %v105_v20 }
  0x4e   :  { %460 = vmatpush3.msra.mxu1 %v89_v21  ;;  %423 = vmatprep.subr.mxu0 %v104_v22 }
  0x4f   :  { %461 = vmatprep.subr.mxu1 %v88_v23  ;;  %424 = vmatpush3.msra.mxu0 %v104_v22 }
  0x50   :  { %462 = vmatpush3.msra.mxu1 %v88_v23  ;;  %425 = vmatprep.subr.mxu0 %v103_v24 }
  0x51   :  { %463 = vmatprep.subr.mxu1 %v87_v25  ;;  %426 = vmatpush3.msra.mxu0 %v103_v24 }
  0x52   :  { %464 = vmatpush3.msra.mxu1 %v87_v25  ;;  %427 = vmatprep.subr.mxu0 %v102_v26 }
  0x53   :  { %465 = vmatprep.subr.mxu1 %v86_v27  ;;  %428 = vmatpush3.msra.mxu0 %v102_v26 }
  0x54   :  { %466 = vmatpush3.msra.mxu1 %v86_v27  ;;  %429 = vmatprep.subr.mxu0 %v101_v28 }
  0x55   :  { %467 = vmatprep.subr.mxu1 %v85_v29  ;;  %430 = vmatpush3.msra.mxu0 %v101_v28 }
  0x56   :  { %468 = vmatpush3.msra.mxu1 %v85_v29  ;;  %431 = vmatprep.subr.mxu0 %v100_v30 }
  0x57   :  { %469 = vmatprep.subr.mxu1 %v84_v31  ;;  %432 = vmatpush3.msra.mxu0 %v100_v30 }
  0x58   :  { %433 = vmatprep.mubr.f32.mxu0 %v667_v32  ;;  %470 = vmatpush3.msra.mxu1 %v84_v31 }
  0x59   :  { %471 = vmatprep.mubr.f32.mxu1 %v669_v33  ;;  %434 = vmatmul.mubr.f32.vlgmr.msra.gmra.mxu0 %v81_v34 }
  0x5a   :  { %472 = vmatmul.mubr.f32.vlgmr.msra.gmra.mxu1 %v77_v35  ;;  %436 = vmatprep.mubr.f32.mxu0 %v672_v36 }
  0x5b   :  { %474 = vmatprep.mubr.f32.mxu1 %v674_v37 }
  0x5d   :  { %437 = vmatmul.mubr.f32.gmra.mxu0 %v83_v38 }
  0x5e   :  { %475 = vmatmul.mubr.f32.gmra.mxu1 %v79_v39 }
 0x119   :  { %v435_v40 = vpop.f32.mrf.mxu0 }
 0x11a   :  { %v473_v41 = vpop.f32.mrf.mxu1 }
 0x11b   :  { %v273_v43 = vadd.f32 %v473_v41, %v435_v40  ;;  %v182_v44 = vpop.f32.mrf.mxu0 }
 0x11c   :  { %v267_v45 = vpop.f32.mrf.mxu1 }
 0x11d   :  { %v294_v46 = vadd.f32 %v356_v42, %v273_v43  ;;  %v268_v47 = vadd.f32 %v267_v45, %v182_v44  ;;  %v438_v48 = vpop.f32.mrf.mxu0 }
 0x11e   :  { %v476_v49 = vpop.f32.mrf.mxu1 }
 0x11f   :  { %v358_v50 = vmul.f32 -1.442695, %v294_v46  ;;  %v293_v51 = vadd.f32 %v356_v42, %v268_v47  ;;  %v283_v52 = vadd.f32 %v476_v49, %v438_v48  ;;  %v192_v53 = vpop.f32.mrf.mxu0 }
 0x120   :  { %v277_v54 = vpop.f32.mrf.mxu1 }
 0x121   :  { %486 = vpow2.f32 %v358_v50  ;;  %v357_v55 = vmul.f32 -1.442695, %v293_v51  ;;  %v296_v56 = vadd.f32 %v356_v42, %v283_v52  ;;  %v278_v57 = vadd.f32 %v277_v54, %v192_v53 }
 0x123   :  { %488 = vpow2.f32 %v357_v55  ;;  %v360_v58 = vmul.f32 -1.442695, %v296_v56  ;;  %v295_v59 = vadd.f32 %v356_v42, %v278_v57 }
 0x125   :  { %490 = vpow2.f32 %v360_v58  ;;  %v359_v60 = vmul.f32 -1.442695, %v295_v59 }
 0x127   :  { %492 = vpow2.f32 %v359_v60 }
 0x12e   :  { %v487_v61 = vpop.eup %486 }
 0x12f   :  { %v310_v62 = vadd.f32 1.0, %v487_v61 }
 0x130   :  { %v489_v63 = vpop.eup %488 }
 0x131   :  { %494 = vrcp.f32 %v310_v62  ;;  %v309_v0 = vadd.f32 1.0, %v489_v63 }
 0x132   :  { %v491_v1 = vpop.eup %490 }
 0x133   :  { %496 = vrcp.f32 %v309_v0  ;;  %v312_v2 = vadd.f32 1.0, %v491_v1 }
 0x134   :  { %v493_v3 = vpop.eup %492 }
 0x135   :  { %498 = vrcp.f32 %v312_v2  ;;  %v311_v4 = vadd.f32 1.0, %v493_v3 }
 0x137   :  { %500 = vrcp.f32 %v311_v4 }
 0x13e   :  { %v495_v7 = vpop.eup %494 }
 0x13f   :  { %v326_v9 = vmul.f32 %v495_v7, %v322_v5 }
 0x140   :  { %v497_v10 = vpop.eup %496 }
 0x141   :  { %v330_v12 = vadd.f32 %v326_v9, %v81_v34  ;;  %v325_v13 = vmul.f32 %v497_v10, %v321_v6 }
 0x142   :  { %v499_v14 = vpop.eup %498 }
 0x143   :  { %334 = vst [vmem:[#allocation10 + $0x8] sm:$0xff] %v330_v12  ;;  %v329_v15 = vadd.f32 %v325_v13, %v667_v32  ;;  %v328_v16 = vmul.f32 %v499_v14, %v324_v8 }
 0x144   :  { %v501_v17 = vpop.eup %500 }
 0x145   :  { %333 = vst [vmem:[#allocation10] sm:$0xff] %v329_v15  ;;  %v332_v18 = vadd.f32 %v328_v16, %v83_v38  ;;  %v327_v19 = vmul.f32 %v501_v17, %v323_v11 }
 0x147   :  { %336 = vst [vmem:[#allocation10 + $0x18] sm:$0xff] %v332_v18  ;;  %v331_v20 = vadd.f32 %v327_v19, %v672_v36 }
 0x149   :  { %335 = vst [vmem:[#allocation10 + $0x10] sm:$0xff] %v331_v20 }
 0x14a   :  { %341 = vsyncadd [#allocation4], 448  ;;  %s618_s4 = smov [#allocation10]  }
 0x14b   :  { %s342_s17 = sshll.u32 %s618_s4, 4  ;;  %s343_s17 = int_to_ptr.vmem [resolvable:$true] %s342_s17 }
 0x14c   :  { %s582_s18 = scalar_lea.vmem %s343_s17, 64  ;;  %s586_s19 = scalar_lea.vmem %s343_s17, 512 }
 0x14d   :  { %p583_p6 = scmp.ne.s32.totalorder %s343_s17, %s582_s18  ;;  %p587_p7 = scmp.lt.s32.totalorder %s343_s17, %s343_s17 }
 0x14e   :  { %p588_p8 = scmp.lt.s32.totalorder %s586_s19, %s582_s18 }
 0x150   :  { %p589_p9 = por %p588_p8, %p587_p7 }
 0x152   :  { %p590_p10 = pnand %p589_p9, %p583_p6 }
 0x154   :  { %593 = shalt.err (!%p590_p10)
}
 0x155   :  { %348 = dma.vmem_to_hbm [thread:$0]  %s343_s17, 64, %s699_s5, [#allocation4], %s611_s22, %s611_s22, %s612_s23  }
 0x156   :  { %608 = dma.done.wait [#allocation4], 512  }
 0x157   :  { %609 = vsyncadd [#allocation4], 4294966784 }
 0x158   :  { %352 = vsyncpa [#allocation3], 1 }
 0x159   :  { %353 = vsyncpa [#allocation6], 1 }
 0x15a   :  { %354 = vsyncpa [#allocation9], 1 }
 0x15b   :  { %355 = vsyncpa [#allocation4], 1 }

</bundles_post_ra>
